<compile_context>
chip_gen: v7x
topology: tpu7x:2x2x1
jax: 0.10.0
libtpu: 0.0.40
codegen_flags: <defaults>
</compile_context>

<pallas_src>
from typing import NamedTuple

import jax
import jax.numpy as jnp
from jax.experimental import pallas as pl
from jax.experimental.pallas import tpu as pltpu


def _ffn_kernel(x_ref, w12_ref, b12_ref, w3_ref, b3_ref, o_ref, acc_ref):
    # Grid: (row tiles, hidden tiles).  Hidden axis carries the accumulator.
    h = pl.program_id(1)
    th = w3_ref.shape[0]  # hidden tile size

    @pl.when(h == 0)
    def _init():
        # Fold b3 into the accumulator init (no extra add on the store path).
        acc_ref[...] = jnp.broadcast_to(
            b3_ref[...].astype(jnp.float32), acc_ref.shape)

    x = x_ref[...]
    # Fused (w1 | w2) matmul: one weight DMA stream and one MXU RHS-push
    # sequence per hidden step; accumulate in f32.
    h12 = jnp.dot(x, w12_ref[...], preferred_element_type=jnp.float32)
    # Resident fused bias block: row h holds [b1_tile_h | b2_tile_h].
    h12 = h12 + b12_ref[pl.ds(h, 1), :].astype(jnp.float32)

    h1 = h12[:, :th]
    h2 = h12[:, th:]
    # SiLU gate in f32 (EUP sigmoid); downcast only for the w3 matmul.
    fused = (h1 * (h2 * jax.nn.sigmoid(h2))).astype(w3_ref.dtype)

    acc_ref[...] += jnp.dot(fused, w3_ref[...],
                            preferred_element_type=jnp.float32)

    @pl.when(h == pl.num_programs(1) - 1)
    def _store():
        o_ref[...] = acc_ref[...].astype(o_ref.dtype)


def _round_up(v, m):
    return (v + m - 1) // m * m


def _pick_tm(M):
    """Row tile: big for prefill (cuts weight re-streaming), tight for decode."""
    if M >= 512:
        return 256
    if M >= 128:
        return 128
    return max(8, _round_up(M, 8))


class PreparedFFN(NamedTuple):
    w12: jax.Array   # (dp, 2*hp): per-hidden-tile interleaved [w1_h | w2_h]
    b12: jax.Array   # (n_h, 2*th): row h = [b1_tile_h | b2_tile_h]
    w3: jax.Array    # (hp, dp)
    b3: jax.Array    # (1, dp)
    dim: int
    hidden: int
    dp: int
    hp: int
    th: int


def prepare_ffn_params(w1, b1, w2, b2, w3, b3, *, th=512, compute_dtype=None):
    """Pad / fuse / (optionally) cast the FFN weights ONCE.

    Call this at init time and reuse the result for every forward call; the
    per-token path then never re-copies the weights.
    """
    dim, hidden = w1.shape
    assert w2.shape == (dim, hidden) and w3.shape == (hidden, dim)
    wdt = jnp.dtype(compute_dtype) if compute_dtype is not None else w1.dtype

    dp = _round_up(dim, 128)
    th_eff = min(_round_up(th, 128), _round_up(hidden, 128))
    hp = _round_up(hidden, th_eff)
    n_h = hp // th_eff

    def pad2(a, rows, cols):
        a = a.astype(wdt)
        if a.shape == (rows, cols):
            return a  # already aligned: no copy
        return jnp.zeros((rows, cols), wdt).at[:a.shape[0], :a.shape[1]].set(a)

    w1p = pad2(w1, dp, hp)
    w2p = pad2(w2, dp, hp)
    w3p = pad2(w3, hp, dp)
    b1p = pad2(b1.reshape(1, -1), 1, hp)
    b2p = pad2(b2.reshape(1, -1), 1, hp)
    b3p = pad2(b3.reshape(1, -1), 1, dp)

    # Interleave w1/w2 per hidden tile: columns [h*2th, h*2th+th) = w1 tile h,
    # the next th columns = w2 tile h.  One streamed operand, one DMA stream.
    w12 = jnp.concatenate(
        [w1p.reshape(dp, n_h, th_eff), w2p.reshape(dp, n_h, th_eff)],
        axis=2).reshape(dp, 2 * hp)
    b12 = jnp.concatenate(
        [b1p.reshape(n_h, th_eff), b2p.reshape(n_h, th_eff)], axis=1)

    return PreparedFFN(w12, b12, w3p, b3p, dim, hidden, dp, hp, th_eff)


def feed_forward_prepared(x, p: PreparedFFN, *, tm=None,
                          vmem_limit_bytes=48 * 1024 * 1024):
    """x: (..., dim) -> (..., dim), using pre-prepared weights."""
    orig_shape = x.shape
    out_dtype = x.dtype
    x2d = x.reshape(-1, p.dim)
    M = x2d.shape[0]

    if tm is None:
        tm = _pick_tm(M)
    tm = max(8, _round_up(tm, 8))
    mp = _round_up(M, tm)

    # Only x is touched per call; zero padding is exact for this FFN.
    xc = x2d.astype(p.w12.dtype)
    if xc.shape != (mp, p.dp):
        xc = jnp.zeros((mp, p.dp), xc.dtype).at[:M, :p.dim].set(xc)

    n_h = p.hp // p.th
    two_th = 2 * p.th
    grid = (mp // tm, n_h)

    out_padded = pl.pallas_call(
        _ffn_kernel,
        out_shape=jax.ShapeDtypeStruct((mp, p.dp), out_dtype),
        grid_spec=pltpu.PrefetchScalarGridSpec(
            num_scalar_prefetch=0,
            grid=grid,
            in_specs=[
                # x row tile (resident across the hidden axis).
                pl.BlockSpec((tm, p.dp), lambda i, h: (i, 0)),
                # Fused [w1|w2] column slice, streamed along the hidden axis.
                pl.BlockSpec((p.dp, two_th), lambda i, h: (0, h)),
                # Fused [b1|b2] biases: full block, fetched once (resident).
                pl.BlockSpec((n_h, two_th), lambda i, h: (0, 0)),
                # w3 row slice, streamed along the hidden axis.
                pl.BlockSpec((p.th, p.dp), lambda i, h: (h, 0)),
                # b3: tiny, fetched once.
                pl.BlockSpec((1, p.dp), lambda i, h: (0, 0)),
            ],
            # Output block index constant across the hidden axis -> resident
            # accumulator pattern; stored once at the last hidden step.
            out_specs=pl.BlockSpec((tm, p.dp), lambda i, h: (i, 0)),
            scratch_shapes=[pltpu.VMEM((tm, p.dp), jnp.float32)],
        ),
        compiler_params=pltpu.CompilerParams(
            dimension_semantics=("parallel", "arbitrary"),
            vmem_limit_bytes=vmem_limit_bytes,
        ),
    )(xc, p.w12, p.b12, p.w3, p.b3)

    return out_padded[:M, :p.dim].reshape(orig_shape)


def feed_forward(x, w1, b1, w2, b2, w3, b3, *, th=512, tm=None,
                 compute_dtype=None, vmem_limit_bytes=48 * 1024 * 1024):
    """One-shot convenience wrapper (prepares weights then runs the kernel).

    For repeated calls with the same weights, call `prepare_ffn_params` once
    and use `feed_forward_prepared` to avoid re-padding weights every call.
    """
    p = prepare_ffn_params(w1, b1, w2, b2, w3, b3, th=th,
                           compute_dtype=compute_dtype)
    return feed_forward_prepared(x, p, tm=tm, vmem_limit_bytes=vmem_limit_bytes)


def _reference(x, w1, b1, w2, b2, w3, b3):
    h1 = x @ w1 + b1
    h2 = x @ w2 + b2
    return (h1 * jax.nn.silu(h2)) @ w3 + b3


if __name__ == "__main__":
    # Small, deterministic problem: batch=2, seq=8, dim=32, hidden=64.
    batch, seq, dim, hidden = 2, 8, 32, 64

    key = jax.random.PRNGKey(0)
    kx, k1, k2, k3, kb1, kb2, kb3 = jax.random.split(key, 7)

    x = jax.random.normal(kx, (batch, seq, dim), dtype=jnp.float32)

    # Deterministic Linear-style init (uniform in +/- 1/sqrt(fan_in)).
    def lin_init(kw, kb, fan_in, fan_out):
        bound = 1.0 / (fan_in ** 0.5)
        w = jax.random.uniform(kw, (fan_in, fan_out), jnp.float32, -bound, bound)
        b = jax.random.uniform(kb, (fan_out,), jnp.float32, -bound, bound)
        return w, b

    w1, b1 = lin_init(k1, kb1, dim, hidden)      # dim -> hidden
    w2, b2 = lin_init(k2, kb2, dim, hidden)      # dim -> hidden (gate)
    w3, b3 = lin_init(k3, kb3, hidden, dim)      # hidden -> dim

    y_ref = _reference(x, w1, b1, w2, b2, w3, b3)

    # f32 path: weights prepared once, reused per call.
    params_f32 = prepare_ffn_params(w1, b1, w2, b2, w3, b3)
    y = jax.block_until_ready(feed_forward_prepared(x, params_f32))
    assert y.shape == x.shape and y.dtype == x.dtype
    assert jnp.allclose(y, y_ref, atol=1e-5, rtol=1e-5), "f32 mismatch vs reference"

    # bf16 compute path (weights cast/fused once, f32 accumulation inside).
    params_bf16 = prepare_ffn_params(w1, b1, w2, b2, w3, b3,
                                     compute_dtype=jnp.bfloat16)
    y_bf16 = jax.block_until_ready(feed_forward_prepared(x, params_bf16))
    assert y_bf16.shape == x.shape
    assert jnp.allclose(y_bf16, y_ref, atol=5e-2, rtol=5e-2), "bf16 mismatch vs reference"

    # One-shot convenience wrapper.
    y2 = jax.block_until_ready(feed_forward(x, w1, b1, w2, b2, w3, b3))
    assert jnp.allclose(y2, y_ref, atol=1e-5, rtol=1e-5), "wrapper mismatch vs reference"

    print("KERNEL_OK")
</pallas_src>

<mosaic_0001>
module attributes {stable_mosaic.version = 11 : i64} {
  func.func @_ffn_kernel(%arg0: i32, %arg1: i32, %arg2: memref<16x128xf32, #tpu.memory_space<vmem>>, %arg3: memref<128x256xf32, #tpu.memory_space<vmem>>, %arg4: memref<1x256xf32, #tpu.memory_space<vmem>>, %arg5: memref<128x128xf32, #tpu.memory_space<vmem>>, %arg6: memref<1x128xf32, #tpu.memory_space<vmem>>, %arg7: memref<16x128xf32, #tpu.memory_space<vmem>>, %arg8: memref<16x128xf32, #tpu.memory_space<vmem>>) attributes {dimension_semantics = [#tpu.dimension_semantics<parallel>, #tpu.dimension_semantics<arbitrary>], iteration_bounds = array<i64: 1, 1>, scalar_prefetch = 0 : i64, scratch_operands = 1 : i64, tpu.core_type = #tpu.core_type<tc>, window_params = [{transform_indices = @transform_0, window_bounds = array<i64: 16, 128>}, {transform_indices = @transform_1, window_bounds = array<i64: 128, 256>}, {pipeline_mode = #tpu.pipeline_mode<synchronous>, transform_indices = @transform_2, window_bounds = array<i64: 1, 256>}, {transform_indices = @transform_3, window_bounds = array<i64: 128, 128>}, {pipeline_mode = #tpu.pipeline_mode<synchronous>, transform_indices = @transform_4, window_bounds = array<i64: 1, 128>}, {transform_indices = @transform_5, window_bounds = array<i64: 16, 128>}]} {
    %c0_i32 = arith.constant 0 : i32
    %0 = arith.cmpi eq, %arg1, %c0_i32 : i32
    %1 = arith.extui %0 : i1 to i32
    %c0_i32_0 = arith.constant 0 : i32
    %2 = arith.cmpi ne, %1, %c0_i32_0 : i32
    scf.if %2 {
      %c0_15 = arith.constant 0 : index
      %c0_16 = arith.constant 0 : index
      %27 = vector.load %arg6[%c0_15, %c0_16] : memref<1x128xf32, #tpu.memory_space<vmem>>, vector<1x128xf32>
      %28 = vector.shape_cast %27 : vector<1x128xf32> to vector<1x128xf32>
      %29 = vector.broadcast %28 : vector<1x128xf32> to vector<16x128xf32>
      %c0_17 = arith.constant 0 : index
      %c0_18 = arith.constant 0 : index
      %30 = vector.load %arg8[%c0_17, %c0_18] : memref<16x128xf32, #tpu.memory_space<vmem>>, vector<16x128xf32>
      tpu.vector_store %arg8[%c0_17, %c0_18], %29 {strides = array<i32>} : memref<16x128xf32, #tpu.memory_space<vmem>>, vector<16x128xf32>,
    } else {
    }
    %c0 = arith.constant 0 : index
    %c0_1 = arith.constant 0 : index
    %3 = vector.load %arg2[%c0, %c0_1] : memref<16x128xf32, #tpu.memory_space<vmem>>, vector<16x128xf32>
    %c0_2 = arith.constant 0 : index
    %c0_3 = arith.constant 0 : index
    %4 = vector.load %arg3[%c0_2, %c0_3] : memref<128x256xf32, #tpu.memory_space<vmem>>, vector<128x256xf32>
    %cst = arith.constant dense<0.000000e+00> : vector<16x256xf32>
    %5 = tpu.matmul %3, %4, %cst {dimension_numbers = #tpu.dot_dimension_numbers<[1], [0], [0], [1], [0, 0, 1, 1], [], []>} : vector<16x128xf32>, vector<128x256xf32>, vector<16x256xf32> -> vector<16x256xf32>
    %6 = arith.index_cast %arg1 : i32 to index
    %c0_4 = arith.constant 0 : index
    %7 = vector.load %arg4[%6, %c0_4] : memref<1x256xf32, #tpu.memory_space<vmem>>, vector<1x256xf32>
    %8 = vector.broadcast %7 : vector<1x256xf32> to vector<16x256xf32>
    %9 = arith.addf %5, %8 : vector<16x256xf32>
    %10 = vector.extract_strided_slice %9 {offsets = [0, 0], sizes = [16, 128], strides = [1, 1]} : vector<16x256xf32> to vector<16x128xf32>
    %11 = vector.extract_strided_slice %9 {offsets = [0, 128], sizes = [16, 128], strides = [1, 1]} : vector<16x256xf32> to vector<16x128xf32>
    %12 = arith.negf %11 : vector<16x128xf32>
    %13 = math.exp %12 : vector<16x128xf32>
    %cst_5 = arith.constant 1.000000e+00 : f32
    %14 = vector.broadcast %cst_5 : f32 to vector<16x128xf32>
    %15 = arith.addf %14, %13 : vector<16x128xf32>
    %16 = arith.divf %14, %15 : vector<16x128xf32>
    %17 = arith.mulf %11, %16 : vector<16x128xf32>
    %18 = arith.mulf %10, %17 : vector<16x128xf32>
    %c0_6 = arith.constant 0 : index
    %c0_7 = arith.constant 0 : index
    %19 = vector.load %arg8[%c0_6, %c0_7] : memref<16x128xf32, #tpu.memory_space<vmem>>, vector<16x128xf32>
    %c0_8 = arith.constant 0 : index
    %c0_9 = arith.constant 0 : index
    %20 = vector.load %arg5[%c0_8, %c0_9] : memref<128x128xf32, #tpu.memory_space<vmem>>, vector<128x128xf32>
    %cst_10 = arith.constant dense<0.000000e+00> : vector<16x128xf32>
    %21 = tpu.matmul %18, %20, %cst_10 {dimension_numbers = #tpu.dot_dimension_numbers<[1], [0], [0], [1], [0, 0, 1, 1], [], []>} : vector<16x128xf32>, vector<128x128xf32>, vector<16x128xf32> -> vector<16x128xf32>
    %22 = arith.addf %19, %21 : vector<16x128xf32>
    %c0_11 = arith.constant 0 : index
    %c0_12 = arith.constant 0 : index
    %23 = vector.load %arg8[%c0_11, %c0_12] : memref<16x128xf32, #tpu.memory_space<vmem>>, vector<16x128xf32>
    tpu.vector_store %arg8[%c0_11, %c0_12], %22 {strides = array<i32>} : memref<16x128xf32, #tpu.memory_space<vmem>>, vector<16x128xf32>,
    %c0_i32_13 = arith.constant 0 : i32
    %24 = arith.cmpi eq, %arg1, %c0_i32_13 : i32
    %25 = arith.extui %24 : i1 to i32
    %c0_i32_14 = arith.constant 0 : i32
    %26 = arith.cmpi ne, %25, %c0_i32_14 : i32
    scf.if %26 {
      %c0_15 = arith.constant 0 : index
      %c0_16 = arith.constant 0 : index
      %27 = vector.load %arg8[%c0_15, %c0_16] : memref<16x128xf32, #tpu.memory_space<vmem>>, vector<16x128xf32>
      %c0_17 = arith.constant 0 : index
      %c0_18 = arith.constant 0 : index
      %28 = vector.load %arg7[%c0_17, %c0_18] : memref<16x128xf32, #tpu.memory_space<vmem>>, vector<16x128xf32>
      tpu.vector_store %arg7[%c0_17, %c0_18], %27 {strides = array<i32>} : memref<16x128xf32, #tpu.memory_space<vmem>>, vector<16x128xf32>,
    } else {
    }
    return
  }
  func.func @transform_0(%arg0: i32, %arg1: i32) -> (i32, i32) {
    %c0_i32 = arith.constant 0 : i32
    %c0_i32_0 = arith.constant 0 : i32
    return %arg0, %c0_i32 : i32, i32
  }
  func.func @transform_1(%arg0: i32, %arg1: i32) -> (i32, i32) {
    %c0_i32 = arith.constant 0 : i32
    %c0_i32_0 = arith.constant 0 : i32
    return %c0_i32, %arg1 : i32, i32
  }
  func.func @transform_2(%arg0: i32, %arg1: i32) -> (i32, i32) {
    %c0_i32 = arith.constant 0 : i32
    %c0_i32_0 = arith.constant 0 : i32
    %c0_i32_1 = arith.constant 0 : i32
    return %c0_i32, %c0_i32_0 : i32, i32
  }
  func.func @transform_3(%arg0: i32, %arg1: i32) -> (i32, i32) {
    %c0_i32 = arith.constant 0 : i32
    %c0_i32_0 = arith.constant 0 : i32
    return %arg1, %c0_i32 : i32, i32
  }
  func.func @transform_4(%arg0: i32, %arg1: i32) -> (i32, i32) {
    %c0_i32 = arith.constant 0 : i32
    %c0_i32_0 = arith.constant 0 : i32
    %c0_i32_1 = arith.constant 0 : i32
    return %c0_i32, %c0_i32_0 : i32, i32
  }
  func.func @transform_5(%arg0: i32, %arg1: i32) -> (i32, i32) {
    %c0_i32 = arith.constant 0 : i32
    %c0_i32_0 = arith.constant 0 : i32
    return %arg0, %c0_i32 : i32, i32
  }
}

</mosaic_0001>

<bundles_post_ra>
// kernel: tpu_custom_call.1
= control target key start
LH: loop header
LB: loop body
LE: loop exit
PB: predicated region body
PF: predicated region fallthrough
CT: control target
= control target key end

     0   :  { %10 = vsyncpa [#allocation4], 0  ;;  %s673_s0 = inlined_call_operand.hbm [shape: f32[16,128], index: 0, kind: input, shape index: {}]   ;;  %s674_s1 = inlined_call_operand.hbm [shape: f32[128,256], index: 1, kind: input, shape index: {}]   ;;  %s675_s2 = inlined_call_operand.vmem [shape: f32[1,256], index: 2, kind: input, shape index: {}]   ;;  %s676_s3 = inlined_call_operand.hbm [shape: f32[128,128], index: 3, kind: input, shape index: {}]   ;;  %s677_s4 = inlined_call_operand.vmem [shape: f32[1,128], index: 4, kind: input, shape index: {}]   ;;  %s678_s5 = inlined_call_operand.hbm [shape: f32[16,128], index: 5, kind: output, shape index: {}]  }
   0x1   :  { %11 = vsyncpa [#allocation7], 0 }
   0x2   :  { %12 = vsyncpa [#allocation5], 0  ;;  %s569_s18 = smov [#allocation6]   ;;  %s475_s22 = scalar_lea.hbm %s674_s1, 4096 }
   0x3   :  { %s30_s19 = sshll.u32 %s569_s18, 4  ;;  %p476_p0 = scmp.ne.s32.totalorder %s674_s1, %s475_s22  ;;  %s31_s19 = int_to_ptr.vmem [resolvable:$true] %s30_s19 }
   0x4   :  { %p479_p1 = scmp.lt.u32.totalorder %s475_s22, %s674_s1 }
   0x6   :  { %p481_p2 = pnand %p479_p1, %p476_p0 }
   0x8   :  { %484 = shalt.err (!%p481_p2)
}
   0x9   :  { %s485_s27 = scalar_lea.vmem %s31_s19, 4096  ;;  %p490_p4 = scmp.lt.s32.totalorder %s31_s19, %s31_s19 }
   0xa   :  { %p486_p3 = scmp.ne.s32.totalorder %s31_s19, %s485_s27  ;;  %p491_p5 = scmp.lt.s32.totalorder %s485_s27, %s485_s27 }
   0xc   :  { %p492_p6 = por %p491_p5, %p490_p4 }
   0xe   :  { %p493_p7 = pnand %p492_p6, %p486_p3 }
  0x10   :  { %496 = shalt.err (!%p493_p7)
}
  0x11   :  { %s570_s28 = smov 256   ;;  %s571_s29 = smov 16  }
  0x12   :  { %36 = dma.hbm_to_vmem [thread:$0]  %s674_s1, 4096, %s31_s19, [#allocation7], %s570_s28, %s570_s28, %s571_s29  }
  0x13   :  { %s572_s7 = smov [#allocation3]   ;;  %s497_s11 = scalar_lea.hbm %s673_s0, 256 }
  0x14   :  { %s18_s8 = sshll.u32 %s572_s7, 4  ;;  %p498_p8 = scmp.ne.s32.totalorder %s673_s0, %s497_s11  ;;  %s19_s8 = int_to_ptr.vmem [resolvable:$true] %s18_s8 }
  0x15   :  { %p501_p9 = scmp.lt.u32.totalorder %s497_s11, %s673_s0 }
  0x17   :  { %p503_p10 = pnand %p501_p9, %p498_p8 }
  0x19   :  { %506 = shalt.err (!%p503_p10)
}
  0x1a   :  { %s507_s16 = scalar_lea.vmem %s19_s8, 256  ;;  %p512_p12 = scmp.lt.s32.totalorder %s19_s8, %s19_s8 }
  0x1b   :  { %p508_p11 = scmp.ne.s32.totalorder %s19_s8, %s507_s16  ;;  %p513_p13 = scmp.lt.s32.totalorder %s507_s16, %s507_s16 }
  0x1d   :  { %p514_p0 = por %p513_p13, %p512_p12 }
  0x1f   :  { %p515_p1 = pnand %p514_p0, %p508_p11 }
  0x21   :  { %518 = shalt.err (!%p515_p1)
}
  0x22   :  { %s573_s1 = smov 128   ;;  %s574_s17 = smov 8  }
  0x23   :  { %24 = dma.hbm_to_vmem [thread:$0]  %s673_s0, 256, %s19_s8, [#allocation4], %s573_s1, %s573_s1, %s574_s17  }
  0x24   :  { %s575_s20 = smov [#allocation8]   ;;  %s519_s24 = scalar_lea.hbm %s676_s3, 2048 }
  0x25   :  { %s44_s21 = sshll.u32 %s575_s20, 4  ;;  %p520_p2 = scmp.ne.s32.totalorder %s676_s3, %s519_s24  ;;  %s45_s21 = int_to_ptr.vmem [resolvable:$true] %s44_s21 }
  0x26   :  { %p523_p3 = scmp.lt.u32.totalorder %s519_s24, %s676_s3 }
  0x28   :  { %p525_p4 = pnand %p523_p3, %p520_p2 }
  0x2a   :  { %528 = shalt.err (!%p525_p4)
}
  0x2b   :  { %s529_s29 = scalar_lea.vmem %s45_s21, 2048  ;;  %p534_p6 = scmp.lt.s32.totalorder %s45_s21, %s45_s21 }
  0x2c   :  { %p530_p5 = scmp.ne.s32.totalorder %s45_s21, %s529_s29  ;;  %p535_p7 = scmp.lt.s32.totalorder %s529_s29, %s529_s29 }
  0x2e   :  { %p536_p8 = por %p535_p7, %p534_p6 }
  0x30   :  { %p537_p9 = pnand %p536_p8, %p530_p5 }
  0x32   :  { %540 = shalt.err (!%p537_p9)
}
  0x33   :  { %50 = dma.hbm_to_vmem [thread:$0]  %s676_s3, 2048, %s45_s21, [#allocation7], %s573_s1, %s573_s1, %s574_s17  }
  0x34   :  { %563 = dma.done.wait [#allocation4], 256  }
  0x35   :  { %564 = vsyncadd [#allocation4], 4294967040 }
  0x36   :  { %565 = dma.done.wait [#allocation7], 6144  }
  0x37   :  { %566 = vsyncadd [#allocation7], 4294961152  ;;  %v576_v0 = vmov 0.0   ;;  %v78_v1 = vld [vmem:[#allocation6 + $0x8] sm:$0xff]  ;;  %v80_v2 = vld [vmem:[#allocation6 + $0x18] sm:$0xff]  ;;  %s577_s8 = smov [#allocation9]  }
  0x38   :  { %187 = vmatprep.mubr.f32.mxu0 %v576_v0  ;;  %v77_v3 = vld [vmem:[#allocation6] sm:$0xff]  ;;  %v394_v4 = vpack.c.bf16 %v80_v2, %v78_v1  ;;  %v79_v5 = vld [vmem:[#allocation6 + $0x10] sm:$0xff]  ;;  %v82_v6 = vld [vmem:[#allocation6 + $0x28] sm:$0xff]  ;;  %s325_s9 = sshll.u32 %s577_s8, 4  ;;  %s326_s9 = int_to_ptr.vmem [resolvable:$true] %s325_s9 }
  0x39   :  { %v84_v7 = vld [vmem:[#allocation6 + $0x38] sm:$0xff]  ;;  %v396_v8 = vpack.c.bf16 %v79_v5, %v77_v3  ;;  %v81_v10 = vld [vmem:[#allocation6 + $0x20] sm:$0xff]  ;;  %v83_v11 = vld [vmem:[#allocation6 + $0x30] sm:$0xff]  ;;  %s541_s10 = scalar_lea.vmem %s326_s9, 256  ;;  %p546_p11 = scmp.lt.s32.totalorder %s326_s9, %s326_s9 }
  0x3a   :  { %v398_v9 = vpack.c.bf16 %v84_v7, %v82_v6  ;;  %v86_v12 = vld [vmem:[#allocation6 + $0x48] sm:$0xff]  ;;  %395 = vmatprep.subr.bf16.mxu0 %v394_v4  ;;  %v88_v13 = vld [vmem:[#allocation6 + $0x58] sm:$0xff]  ;;  %v400_v14 = vpack.c.bf16 %v83_v11, %v81_v10  ;;  %v85_v16 = vld [vmem:[#allocation6 + $0x40] sm:$0xff]  ;;  %v113_v11 = vlaneseq  ;;  %p542_p10 = scmp.ne.s32.totalorder %s326_s9, %s541_s10  ;;  %p547_p12 = scmp.lt.s32.totalorder %s541_s10, %s541_s10 }
  0x3b   :  { %397 = vmatpush1.bf16.msra.mxu0 %v396_v8  ;;  %v402_v15 = vpack.c.bf16 %v88_v13, %v86_v12  ;;  %v87_v17 = vld [vmem:[#allocation6 + $0x50] sm:$0xff]  ;;  %v90_v18 = vld [vmem:[#allocation6 + $0x68] sm:$0xff]  ;;  %v92_v19 = vld [vmem:[#allocation6 + $0x78] sm:$0xff] }
  0x3c   :  { %399 = vmatprep.subr.bf16.mxu0 %v398_v9  ;;  %v404_v20 = vpack.c.bf16 %v87_v17, %v85_v16  ;;  %v406_v21 = vpack.c.bf16 %v92_v19, %v90_v18  ;;  %v89_v22 = vld [vmem:[#allocation6 + $0x60] sm:$0xff]  ;;  %v91_v23 = vld [vmem:[#allocation6 + $0x70] sm:$0xff]  ;;  %v94_v24 = vld [vmem:[#allocation6 + $0x88] sm:$0xff]  ;;  %v114_v12 = vshrl.u32 %v113_v11, 7  ;;  %p548_p13 = por %p547_p12, %p546_p11 }
  0x3d   :  { %v96_v25 = vld [vmem:[#allocation6 + $0x98] sm:$0xff]  ;;  %v408_v26 = vpack.c.bf16 %v91_v23, %v89_v22  ;;  %v93_v28 = vld [vmem:[#allocation6 + $0x80] sm:$0xff]  ;;  %v95_v29 = vld [vmem:[#allocation6 + $0x90] sm:$0xff] }
  0x3e   :  { %v410_v27 = vpack.c.bf16 %v96_v25, %v94_v24  ;;  %v98_v30 = vld [vmem:[#allocation6 + $0xa8] sm:$0xff]  ;;  %v100_v31 = vld [vmem:[#allocation6 + $0xb8] sm:$0xff]  ;;  %v412_v32 = vpack.c.bf16 %v95_v29, %v93_v28  ;;  %v97_v34 = vld [vmem:[#allocation6 + $0xa0] sm:$0xff]  ;;  %v119_v13 = vsub.s32 1, %v114_v12  ;;  %v115_v28 = vsub.s32 0, %v114_v12  ;;  %p549_p0 = pnand %p548_p13, %p542_p10 }
  0x3f   :  { %401 = vmatpush1.bf16.msra.mxu0 %v400_v14  ;;  %v414_v33 = vpack.c.bf16 %v100_v31, %v98_v30  ;;  %v99_v35 = vld [vmem:[#allocation6 + $0xb0] sm:$0xff]  ;;  %v102_v36 = vld [vmem:[#allocation6 + $0xc8] sm:$0xff]  ;;  %v104_v37 = vld [vmem:[#allocation6 + $0xd8] sm:$0xff] }
  0x40   :  { %403 = vmatprep.subr.bf16.mxu0 %v402_v15  ;;  %v416_v38 = vpack.c.bf16 %v99_v35, %v97_v34  ;;  %v418_v39 = vpack.c.bf16 %v104_v37, %v102_v36  ;;  %v101_v40 = vld [vmem:[#allocation6 + $0xc0] sm:$0xff]  ;;  %v103_v41 = vld [vmem:[#allocation6 + $0xd0] sm:$0xff]  ;;  %v106_v42 = vld [vmem:[#allocation6 + $0xe8] sm:$0xff] }
  0x41   :  { %v108_v43 = vld [vmem:[#allocation6 + $0xf8] sm:$0xff]  ;;  %v420_v44 = vpack.c.bf16 %v103_v41, %v101_v40  ;;  %v105_v46 = vld [vmem:[#allocation6 + $0xe0] sm:$0xff]  ;;  %v107_v47 = vld [vmem:[#allocation6 + $0xf0] sm:$0xff] }
  0x42   :  { %v422_v45 = vpack.c.bf16 %v108_v43, %v106_v42  ;;  %v424_v48 = vpack.c.bf16 %v107_v47, %v105_v46  ;;  %v75_v49 = vld [vmem:[#allocation3] sm:$0xff]  ;;  %v76_v50 = vld [vmem:[#allocation3 + $0x8] sm:$0xff]  ;;  %v218_v51 = vld [vmem:[#allocation8] sm:$0xff] }
  0x43   :  { %405 = vmatpush1.bf16.msra.mxu0 %v404_v20  ;;  %v219_v52 = vld [vmem:[#allocation8 + $0x8] sm:$0xff]  ;;  %v220_v54 = vld [vmem:[#allocation8 + $0x10] sm:$0xff]  ;;  %v221_v55 = vld [vmem:[#allocation8 + $0x18] sm:$0xff] }
  0x44   :  { %407 = vmatprep.subr.bf16.mxu0 %v406_v21  ;;  %v426_v53 = vpack.c.bf16 %v219_v52, %v218_v51  ;;  %v430_v56 = vpack.c.bf16 %v221_v55, %v220_v54  ;;  %v222_v57 = vld [vmem:[#allocation8 + $0x20] sm:$0xff]  ;;  %v223_v58 = vld [vmem:[#allocation8 + $0x28] sm:$0xff]  ;;  %v224_v60 = vld [vmem:[#allocation8 + $0x30] sm:$0xff] }
  0x45   :  { %v434_v59 = vpack.c.bf16 %v223_v58, %v222_v57  ;;  %v225_v61 = vld [vmem:[#allocation8 + $0x38] sm:$0xff]  ;;  %v226_v63 = vld [vmem:[#allocation8 + $0x40] sm:$0xff]  ;;  %v228_v2 = vld [vmem:[#allocation8 + $0x50] sm:$0xff] }
  0x46   :  { %427 = vmatprep.subr.bf16.mxu1 %v426_v53  ;;  %v438_v62 = vpack.c.bf16 %v225_v61, %v224_v60  ;;  %v229_v3 = vld [vmem:[#allocation8 + $0x58] sm:$0xff]  ;;  %v230_v5 = vld [vmem:[#allocation8 + $0x60] sm:$0xff]  ;;  %v231_v6 = vld [vmem:[#allocation8 + $0x68] sm:$0xff] }
  0x47   :  { %409 = vmatpush1.bf16.msra.mxu0 %v408_v26  ;;  %429 = vmatpush3.bf16.msra.mxu1 %v426_v53  ;;  %v446_v4 = vpack.c.bf16 %v229_v3, %v228_v2  ;;  %v450_v7 = vpack.c.bf16 %v231_v6, %v230_v5  ;;  %v232_v8 = vld [vmem:[#allocation8 + $0x70] sm:$0xff]  ;;  %v233_v9 = vld [vmem:[#allocation8 + $0x78] sm:$0xff] }
  0x48   :  { %411 = vmatprep.subr.bf16.mxu0 %v410_v27  ;;  %431 = vmatprep.subr.bf16.mxu1 %v430_v56  ;;  %v454_v10 = vpack.c.bf16 %v233_v9, %v232_v8  ;;  %v111_v14 = vld [vmem:[%s675_s2] sm:$0x3] }
  0x49   :  { %v120_v15 = vrot.slane %v111_v14, %v119_v13  ;;  %v116_v29 = vrot.slane %v111_v14, %v115_v28 }
  0x4b   :  { %413 = vmatpush1.bf16.msra.mxu0 %v412_v32  ;;  %433 = vmatpush3.bf16.msra.mxu1 %v430_v56 }
  0x4c   :  { %415 = vmatprep.subr.bf16.mxu0 %v414_v33  ;;  %435 = vmatprep.subr.bf16.mxu1 %v434_v59 }
  0x4f   :  { %417 = vmatpush1.bf16.msra.mxu0 %v416_v38  ;;  %437 = vmatpush3.bf16.msra.mxu1 %v434_v59  ;;  %v338_v38 = vld [vmem:[%s677_s4] ss:$0 sm:$0xff] }
  0x50   :  { %419 = vmatprep.subr.bf16.mxu0 %v418_v39  ;;  %439 = vmatprep.subr.bf16.mxu1 %v438_v62 }
  0x53   :  { %421 = vmatpush1.bf16.msra.mxu0 %v420_v44  ;;  %441 = vmatpush3.bf16.msra.mxu1 %v438_v62 }
  0x54   :  { %423 = vmatprep.subr.bf16.mxu0 %v422_v45 }
  0x57   :  { %425 = vmatpush1.bf16.msra.mxu0 %v424_v48 }
  0x5a   :  { %188 = vmatmul.mubr.f32.vlgmr.msra.gmra.mrb[0].mxu0 %v75_v49 }
  0x5b   :  { %193 = vmatprep.mubr.f32.mxu0 %v576_v0  ;;  %v227_v0 = vld [vmem:[#allocation8 + $0x48] sm:$0xff] }
  0x5c   :  { %v442_v1 = vpack.c.bf16 %v227_v0, %v226_v63 }
  0x5e   :  { %194 = vmatmul.mubr.f32.gmra.mrb[2].mxu0 %v76_v50  ;;  %443 = vmatprep.subr.bf16.mxu1 %v442_v1 }
  0x5f   :  { %445 = vmatpush3.bf16.msra.mxu1 %v442_v1 }
  0x60   :  { %447 = vmatprep.subr.bf16.mxu1 %v446_v4 }
  0x63   :  { %449 = vmatpush3.bf16.msra.mxu1 %v446_v4 }
  0x64   :  { %451 = vmatprep.subr.bf16.mxu1 %v450_v7 }
  0x67   :  { %453 = vmatpush3.bf16.msra.mxu1 %v450_v7 }
  0x68   :  { %455 = vmatprep.subr.bf16.mxu1 %v454_v10 }
  0x6b   :  { %457 = vmatpush3.bf16.msra.mxu1 %v454_v10 }
 0x12d   :  { %v189_v16 = vpop.f32.mrb[0].mxu0 }
 0x12e   :  { %v191_v17 = vpop.f32.mrb[1].mxu0  ;;  %v190_v31 = vadd.f32 %v189_v16, %v116_v29 }
 0x12f   :  { %v192_v18 = vadd.f32 %v191_v17, %v120_v15 }
 0x131   :  { %v339_v19 = vmul.f32 -1.442695, %v192_v18  ;;  %v195_v20 = vpop.f32.mrb[2].mxu0 }
 0x132   :  { %v197_v21 = vpop.f32.mrb[3].mxu0  ;;  %v196_v35 = vadd.f32 %v195_v20, %v116_v29 }
 0x133   :  { %467 = vpow2.f32 %v339_v19  ;;  %v198_v22 = vadd.f32 %v197_v21, %v120_v15 }
 0x135   :  { %v340_v23 = vmul.f32 -1.442695, %v198_v22 }
 0x137   :  { %469 = vpow2.f32 %v340_v23 }
 0x13d   :  { %v468_v24 = vpop.eup %467 }
 0x13e   :  { %v206_v25 = vadd.f32 1.0, %v468_v24 }
 0x140   :  { %471 = vrcp.f32 %v206_v25 }
 0x141   :  { %v470_v26 = vpop.eup %469 }
 0x142   :  { %v207_v27 = vadd.f32 1.0, %v470_v26 }
 0x144   :  { %473 = vrcp.f32 %v207_v27 }
 0x14a   :  { %v472_v30 = vpop.eup %471 }
 0x14b   :  { %v212_v32 = vmul.f32 %v472_v30, %v192_v18 }
 0x14d   :  { %v214_v33 = vmul.f32 %v212_v32, %v190_v31 }
 0x14e   :  { %v474_v34 = vpop.eup %473 }
 0x14f   :  { %v213_v36 = vmul.f32 %v474_v34, %v198_v22  ;;  %391 = vmatprep.mubr.f32.mxu1 %v214_v33 }
 0x151   :  { %v215_v37 = vmul.f32 %v213_v36, %v196_v35 }
 0x153   :  { %392 = vmatmul.mubr.f32.vlgmr.msra.gmra.mrb[0].mxu1 %v215_v37 }
 0x226   :  { %v393_v39 = vpop.f32.mrb[0].mxu1 }
 0x227   :  { %v310_v40 = vadd.f32 %v393_v39, %v338_v38  ;;  %v300_v41 = vpop.f32.mrb[1].mxu1 }
 0x228   :  { %v309_v42 = vadd.f32 %v338_v38, %v300_v41 }
 0x229   :  { %319 = vst [vmem:[#allocation9 + $0x8] sm:$0xff] %v310_v40 }
 0x22a   :  { %318 = vst [vmem:[#allocation9] sm:$0xff] %v309_v42 }
 0x22b   :  { %552 = shalt.err (!%p549_p0)
}
 0x22c   :  { %s553_s4 = scalar_lea.hbm %s678_s5, 256 }
 0x22d   :  { %p554_p1 = scmp.ne.s32.totalorder %s678_s5, %s553_s4  ;;  %p557_p2 = scmp.lt.u32.totalorder %s553_s4, %s678_s5 }
 0x22f   :  { %p559_p3 = pnand %p557_p2, %p554_p1 }
 0x231   :  { %562 = shalt.err (!%p559_p3)
}
 0x232   :  { %331 = dma.vmem_to_hbm [thread:$0]  %s326_s9, 256, %s678_s5, [#allocation5], %s573_s1, %s573_s1, %s574_s17  }
 0x233   :  { %567 = dma.done.wait [#allocation5], 256  }
 0x234   :  { %568 = vsyncadd [#allocation5], 4294967040 }
 0x235   :  { %335 = vsyncpa [#allocation4], 1 }
 0x236   :  { %336 = vsyncpa [#allocation7], 1 }
 0x237   :  { %337 = vsyncpa [#allocation5], 1 }

</bundles_post_ra>
